<compile_context>
chip_gen: v7x
topology: tpu7x:2x2x1
jax: 0.10.0
libtpu: 0.0.40
codegen_flags: <defaults>
</compile_context>

<pallas_src>
from itertools import combinations

import numpy as np
import jax
import jax.numpy as jnp
from jax.experimental import pallas as pl
from jax.experimental.pallas import tpu as pltpu

EPS = 1e-6  # TODO(synk): CliffordAlgebra EPS constant not given in source; assumed 1e-6
SUBSPACE_SIZES = np.array([1, 3, 3, 1])             # grades 0..3 of Cl(3,0,0)
BLADE_GRADE = np.array([0, 1, 1, 1, 2, 2, 2, 3])    # grade of each blade

_PARALLEL = pltpu.CompilerParams(dimension_semantics=("parallel",))


# ----------------------------------------------------------------------------
# Clifford algebra (1,1,1): Cayley table for basis [1,e1,e2,e3,e12,e13,e23,e123]
# ----------------------------------------------------------------------------
def _build_cayley():
    blades = [()]
    for g in range(1, 4):
        blades += list(combinations(range(3), g))
    index = {b: i for i, b in enumerate(blades)}
    cayley = np.zeros((8, 8, 8), dtype=np.float32)
    for i, bi in enumerate(blades):
        for k, bk in enumerate(blades):
            arr = list(bi) + list(bk)
            sign = 1.0
            changed = True
            while changed:
                changed = False
                for t in range(len(arr) - 1):
                    if arr[t] == arr[t + 1]:            # e_a e_a = +1 (metric 1,1,1)
                        arr = arr[:t] + arr[t + 2:]
                        changed = True
                        break
                    if arr[t] > arr[t + 1]:
                        arr[t], arr[t + 1] = arr[t + 1], arr[t]
                        sign = -sign
                        changed = True
            cayley[i, index[tuple(arr)], k] = sign       # e_i e_k -> sign * e_j
    return cayley


CAYLEY = _build_cayley()


# ----------------------------------------------------------------------------
# Pallas kernels
# ----------------------------------------------------------------------------
def _linear_kernel(x_ref, w_ref, b_ref, o_ref):
    xb = x_ref[...].astype(jnp.bfloat16)
    o_ref[...] = jnp.dot(xb, w_ref[...], preferred_element_type=jnp.float32) + b_ref[...]


def _message_kernel(dv_ref, si_ref, sj_ref, pd_ref,
                    wv_ref, bv_ref, w1a_ref, w1b_ref, w1c_ref, w1d_ref, b1_ref,
                    w2_ref, b2_ref, w1p_ref, b1p_ref, w2p_ref, b2p_ref,
                    msg_ref, pm_ref):
    f32, bf16 = jnp.float32, jnp.bfloat16
    dvb = dv_ref[...].astype(bf16)
    # fused 'v' MVLinear on (v_j - v_i)
    v_ij = jnp.dot(dvb, wv_ref[...], preferred_element_type=f32) + bv_ref[...]
    v_sq = v_ij * v_ij                                   # f32 elementwise (VPU)
    # message_net layer 1: W1 split per input group; edge_attr pooling folded into W1c
    h1 = (jnp.dot(si_ref[...].astype(bf16), w1a_ref[...], preferred_element_type=f32)
          + jnp.dot(sj_ref[...].astype(bf16), w1b_ref[...], preferred_element_type=f32)
          + jnp.dot(v_sq.astype(bf16), w1c_ref[...], preferred_element_type=f32)
          + pd_ref[...] * w1d_ref[...]
          + b1_ref[...])
    h1 = jnp.maximum(h1, 0.0)
    msg = jnp.dot(h1.astype(bf16), w2_ref[...], preferred_element_type=f32) + b2_ref[...]
    # pos_net MLP; grade->blade repeat folded into W2p
    h2 = jnp.maximum(jnp.dot(msg.astype(bf16), w1p_ref[...], preferred_element_type=f32)
                     + b1p_ref[...], 0.0)
    pm8 = jnp.dot(h2.astype(bf16), w2p_ref[...], preferred_element_type=f32) + b2p_ref[...]
    msg_ref[...] = msg
    pm_ref[...] = v_ij * pm8


def _update_kernel(s_ref, m_ref, w1s_ref, w1m_ref, b1_ref, w2_ref, b2_ref, o_ref):
    f32, bf16 = jnp.float32, jnp.bfloat16
    s = s_ref[...]
    h = jnp.maximum(jnp.dot(s.astype(bf16), w1s_ref[...], preferred_element_type=f32)
                    + jnp.dot(m_ref[...].astype(bf16), w1m_ref[...], preferred_element_type=f32)
                    + b1_ref[...], 0.0)
    o_ref[...] = s + jnp.dot(h.astype(bf16), w2_ref[...], preferred_element_type=f32) + b2_ref[...]


def _gp_layer_kernel(x_ref, wlr_ref, blr_ref, wtop_ref, wbot_ref, bout_ref,
                     pool_ref, arep_ref, o_ref):
    # Fused left/right MVLinear + geometric product + 'out' MVLinear + MVLayerNorm.
    f32, bf16 = jnp.float32, jnp.bfloat16
    x = x_ref[...]
    d = x.shape[-1]
    xb = x.astype(bf16)
    # columns of W_lr: 8 "left blade-i broadcast" slabs then 8 "right Cayley(i)" slabs
    y = jnp.dot(xb, wlr_ref[...], preferred_element_type=f32) + blr_ref[...]      # (T, 16d)
    acc = y[:, 0:2 * d] * y[:, 8 * d:10 * d]
    for m in range(1, 4):
        lo = 2 * m * d
        acc = acc + y[:, lo:lo + 2 * d] * y[:, 8 * d + lo:8 * d + lo + 2 * d]
    gp = acc[:, :d] + acc[:, d:]                                                  # (T, d) f32
    # linear_out over cat([gp, vec1], channel dim) == gp @ Wtop + x @ Wbot
    h = (jnp.dot(gp.astype(bf16), wtop_ref[...], preferred_element_type=f32)
         + jnp.dot(xb, wbot_ref[...], preferred_element_type=f32)
         + bout_ref[...])
    # MVLayerNorm: per-channel norm (repeated 8x on lanes), mean over channels
    nsq_rep = jnp.dot(h * h, pool_ref[...], preferred_element_type=f32)
    norm_rep = jnp.sqrt(nsq_rep)
    mean = jnp.sum(norm_rep, axis=-1, keepdims=True) * (1.0 / d) + EPS
    o_ref[...] = h * arep_ref[...] / mean


# ----------------------------------------------------------------------------
# Pallas wrappers
# ----------------------------------------------------------------------------
def _round_up(n, m):
    return ((n + m - 1) // m) * m


def _row_plan(m, tile):
    t = min(tile, _round_up(max(m, 1), 128))
    return _round_up(max(m, 1), t), t


def _pad_rows_to(x, rows):
    pad = rows - x.shape[0]
    if pad:
        x = jnp.pad(x, ((0, pad), (0, 0)))
    return x


def _rspec(t, n):
    return pl.BlockSpec((t, n), lambda i: (i, 0))


def _wspec(a):
    return pl.BlockSpec(a.shape, lambda i: (0, 0))


def pallas_linear(x, w, b, tile=1024):
    m0, fin = x.shape
    fout = w.shape[1]
    mp, t = _row_plan(m0, tile)
    xp = _pad_rows_to(x.astype(jnp.float32), mp)
    out = pl.pallas_call(
        _linear_kernel,
        out_shape=jax.ShapeDtypeStruct((mp, fout), jnp.float32),
        grid=(mp // t,),
        in_specs=[_rspec(t, fin), _wspec(w), _wspec(b)],
        out_specs=_rspec(t, fout),
        compiler_params=_PARALLEL,
    )(xp, w, b)
    return out[:m0]


def pallas_message(p, dv, s_i, s_j, posdiff, tile=1024):
    e0, d = dv.shape
    hs = s_i.shape[1]
    mp, t = _row_plan(e0, tile)
    data = [_pad_rows_to(a, mp) for a in (dv, s_i, s_j, posdiff)]
    names = ("Wv", "bv", "W1a", "W1b", "W1c", "W1d", "b1", "W2", "b2",
             "W1p", "b1p", "W2p", "b2p")
    weights = [p[k] for k in names]
    msg, pm = pl.pallas_call(
        _message_kernel,
        out_shape=(jax.ShapeDtypeStruct((mp, hs), jnp.float32),
                   jax.ShapeDtypeStruct((mp, d), jnp.float32)),
        grid=(mp // t,),
        in_specs=[_rspec(t, d), _rspec(t, hs), _rspec(t, hs), _rspec(t, 1)]
                 + [_wspec(w) for w in weights],
        out_specs=(_rspec(t, hs), _rspec(t, d)),
        compiler_params=_PARALLEL,
    )(*data, *weights)
    return msg[:e0], pm[:e0]


def pallas_update(p, s, m, tile=1024):
    n0, hs = s.shape
    mp, t = _row_plan(n0, tile)
    sp, mp_ = _pad_rows_to(s, mp), _pad_rows_to(m, mp)
    out = pl.pallas_call(
        _update_kernel,
        out_shape=jax.ShapeDtypeStruct((mp, hs), jnp.float32),
        grid=(mp // t,),
        in_specs=[_rspec(t, hs), _rspec(t, hs), _wspec(p["W1s"]), _wspec(p["W1m"]),
                  _wspec(p["b1"]), _wspec(p["W2"]), _wspec(p["b2"])],
        out_specs=_rspec(t, hs),
        compiler_params=_PARALLEL,
    )(sp, mp_, p["W1s"], p["W1m"], p["b1"], p["W2"], p["b2"])
    return out[:n0]


def pallas_gp_layer(p, x, tile=1024):
    n0, d = x.shape
    mp, t = _row_plan(n0, tile)
    xp = _pad_rows_to(x, mp)
    out = pl.pallas_call(
        _gp_layer_kernel,
        out_shape=jax.ShapeDtypeStruct((mp, d), jnp.float32),
        grid=(mp // t,),
        in_specs=[_rspec(t, d), _wspec(p["W_lr"]), _wspec(p["b_lr"]), _wspec(p["W_top"]),
                  _wspec(p["W_bot"]), _wspec(p["b_out"]), _wspec(p["POOL"]), _wspec(p["a_rep"])],
        out_specs=_rspec(t, d),
        compiler_params=_PARALLEL,
    )(xp, p["W_lr"], p["b_lr"], p["W_top"], p["W_bot"], p["b_out"], p["POOL"], p["a_rep"])
    return out[:n0]


# ----------------------------------------------------------------------------
# Parameter construction (deterministic, synthetic) + kernel-ready packing
# ----------------------------------------------------------------------------
def init_linear(key, fin, fout, scale=0.2):
    k1, k2 = jax.random.split(key)
    return {"W": scale * jax.random.normal(k1, (fin, fout), jnp.float32),
            "b": scale * jax.random.normal(k2, (fout,), jnp.float32)}


def init_mlp2(key, fin, fhid, fout):
    k1, k2 = jax.random.split(key)
    l1, l2 = init_linear(k1, fin, fhid), init_linear(k2, fhid, fout)
    return {"W1": l1["W"], "b1": l1["b"], "W2": l2["W"], "b2": l2["b"]}


def init_mvlinear(key, in_f, out_f, subspaces=True, scale=0.2):
    k1, k2 = jax.random.split(key)
    if subspaces:
        W = scale * jax.random.normal(k1, (out_f, in_f, 4), jnp.float32)
        W_exp = jnp.repeat(W, jnp.asarray(SUBSPACE_SIZES), axis=-1, total_repeat_length=8)
    else:
        W = scale * jax.random.normal(k1, (out_f, in_f), jnp.float32)
        W_exp = jnp.broadcast_to(W[..., None], (out_f, in_f, 8))
    bias = scale * jax.random.normal(k2, (out_f,), jnp.float32)
    # block-diagonal over the 8 blades: W_big[i*8+b, o*8+b] = W_exp[o, i, b]
    W_big = jnp.einsum("oib,bc->iboc", W_exp, jnp.eye(8, dtype=jnp.float32))
    W_big = W_big.reshape(in_f * 8, out_f * 8)
    b_big = jnp.zeros((out_f, 8), jnp.float32).at[:, 0].set(bias).reshape(-1)  # bias -> scalar blade
    return {"W": W_big, "b": b_big}


def init_block(key, hs, hv):
    keys = jax.random.split(key, 7)
    return {
        "v": init_mvlinear(keys[0], hv, hv, True),
        "message_net": init_mlp2(keys[1], 2 * hs + hv + 1, hs, hs),
        "update_net": init_mlp2(keys[2], hs + hs, hs, hs),
        "pos_net": init_mlp2(keys[3], hs, hs, hv * 4),
        "v_update": {
            "left": init_mvlinear(keys[4], hv, hv, True),
            "right": init_mvlinear(keys[5], hv, hv, True),
            "out": init_mvlinear(keys[6], 2 * hv, hv, True),
            "norm_a": jnp.ones((hv,), jnp.float32),
        },
    }


def init_model(key, hs, hv, num_tokens, num_layers, in_features=1, out_features=1):
    keys = jax.random.split(key, num_layers + 3)
    return {
        "aa_embedding": 0.2 * jax.random.normal(keys[0], (num_tokens, hs), jnp.float32),
        "feature_embedding": init_mvlinear(keys[1], in_features, hv, False),
        "projection": init_mvlinear(keys[2], hv, out_features, False),
        "layers": [init_block(keys[3 + i], hs, hv) for i in range(num_layers)],
    }


def _bf(x):
    return jnp.asarray(np.asarray(x, np.float32), jnp.bfloat16)


def _row(x):
    return jnp.asarray(np.asarray(x, np.float32).reshape(1, -1), jnp.float32)


def pack_block(raw, hs, hv):
    """Fold the per-layer ops into kernel-ready (mostly bf16) weights."""
    d = hv * 8
    eye_c = np.eye(hv, dtype=np.float32)

    # ---- fused message kernel (v MVLinear + edge_attr + message_net + pos_net) ----
    msg, pos, vlin = raw["message_net"], raw["pos_net"], raw["v"]
    W1 = np.asarray(msg["W1"], np.float32)
    W1a, W1b = W1[:hs], W1[hs:2 * hs]
    W1c, W1d = W1[2 * hs:2 * hs + hv], W1[2 * hs + hv:]
    pool8 = np.kron(eye_c, np.ones((8, 1), np.float32))            # (d, hv): per-channel blade sum
    rep = np.zeros((hv * 4, d), np.float32)                         # grade -> blade repeat
    for c in range(hv):
        for b in range(8):
            rep[c * 4 + BLADE_GRADE[b], c * 8 + b] = 1.0
    message = {
        "Wv": _bf(vlin["W"]), "bv": _row(vlin["b"]),
        "W1a": _bf(W1a), "W1b": _bf(W1b), "W1c": _bf(pool8 @ W1c), "W1d": _row(W1d),
        "b1": _row(msg["b1"]), "W2": _bf(msg["W2"]), "b2": _row(msg["b2"]),
        "W1p": _bf(pos["W1"]), "b1p": _row(pos["b1"]),
        "W2p": _bf(np.asarray(pos["W2"], np.float32) @ rep),
        "b2p": _row(np.asarray(pos["b2"], np.float32) @ rep),
    }

    # ---- fused scalar-update kernel ----
    upd = raw["update_net"]
    W1u = np.asarray(upd["W1"], np.float32)
    update = {"W1s": _bf(W1u[:hs]), "W1m": _bf(W1u[hs:]), "b1": _row(upd["b1"]),
              "W2": _bf(upd["W2"]), "b2": _row(upd["b2"])}

    # ---- fused left/right MVLinear + geometric product + out MVLinear + MVLayerNorm ----
    vu = raw["v_update"]
    WL, bL = np.asarray(vu["left"]["W"], np.float32), np.asarray(vu["left"]["b"], np.float32)
    WR, bR = np.asarray(vu["right"]["W"], np.float32), np.asarray(vu["right"]["b"], np.float32)
    w_slabs, b_slabs = [], []
    for i in range(8):                                   # left: broadcast blade i to all 8 lanes
        bi = np.zeros((8, 8), np.float32)
        bi[i, :] = 1.0
        bb = np.kron(eye_c, bi)
        w_slabs.append(WL @ bb)
        b_slabs.append(bL @ bb)
    for i in range(8):                                   # right: signed blade permutation by e_i
        pp = np.kron(eye_c, CAYLEY[i].T)                 # [k, j] = CAYLEY[i, j, k]
        w_slabs.append(WR @ pp)
        b_slabs.append(bR @ pp)
    Wout = np.asarray(vu["out"]["W"], np.float32)        # (2d, d)
    gp = {
        "W_lr": _bf(np.concatenate(w_slabs, axis=1)),    # (d, 16d)
        "b_lr": _row(np.concatenate(b_slabs, axis=0)),   # (1, 16d)
        "W_top": _bf(Wout[:d]), "W_bot": _bf(Wout[d:]), "b_out": _row(vu["out"]["b"]),
        "POOL": jnp.asarray(np.kron(eye_c, np.ones((8, 8), np.float32)), jnp.float32),
        "a_rep": _row(np.repeat(np.asarray(vu["norm_a"], np.float32), 8)),
    }
    return {"message": message, "update": update, "gp": gp}


def pack_model(raw, hs, hv):
    return {
        "aa_embedding": raw["aa_embedding"],
        "feat_W": _bf(raw["feature_embedding"]["W"]), "feat_b": _row(raw["feature_embedding"]["b"]),
        "proj_W": _bf(raw["projection"]["W"]), "proj_b": _row(raw["projection"]["b"]),
        "layers": [pack_block(lp, hs, hv) for lp in raw["layers"]],
    }


# ----------------------------------------------------------------------------
# Model apply functions (plain-JAX glue calling Pallas kernels)
# ----------------------------------------------------------------------------
def knn_graph_jax(x, k, batch):
    d2 = jnp.sum((x[:, None, :] - x[None, :, :]) ** 2, axis=-1)
    same = batch[:, None] == batch[None, :]
    d2 = jnp.where(same, d2, jnp.inf)
    _, nbr = jax.lax.top_k(-d2, k)                 # loop=True: self included (dist 0)
    rec = jnp.repeat(jnp.arange(x.shape[0]), k)    # center / target nodes
    send = nbr.reshape(-1)                         # neighbor / source nodes
    return jnp.stack([send, rec])


def block_forward(p, s, v, positions, edge_index):
    send, rec = edge_index[0], edge_index[1]
    n = v.shape[0]

    dv = v[rec] - v[send]                                          # v_j - v_i   (E, hv*8)
    posdiff = (positions[send] - positions[rec])[:, None]          # (E, 1)
    msg, pos_msg = pallas_message(p["message"], dv, s[send], s[rec], posdiff)

    num_messages = jax.ops.segment_sum(jnp.ones(send.shape, jnp.float32), send,
                                       num_segments=n)[:, None]
    # knn with loop=True guarantees every node appears as a sender (self edge),
    # so num_messages >= 1 by construction (no host-sync assert).
    inv_sqrt = 1.0 / jnp.sqrt(num_messages)
    msg_aggr = jax.ops.segment_sum(msg, rec, num_segments=n) * inv_sqrt
    pm_aggr = jax.ops.segment_sum(pos_msg, rec, num_segments=n) * inv_sqrt

    s_new = pallas_update(p["update"], s, msg_aggr)
    v_new = pallas_gp_layer(p["gp"], pm_aggr) + v
    return s_new, v_new


def featurization(params, seqs, coords, batch_idx, num_graphs):
    s = params["aa_embedding"][seqs]
    sums = jax.ops.segment_sum(coords, batch_idx, num_segments=num_graphs)
    cnts = jax.ops.segment_sum(jnp.ones((coords.shape[0], 1), jnp.float32), batch_idx,
                               num_segments=num_graphs)
    coords_mean = (sums / cnts)[batch_idx]
    ci = coords - coords_mean
    mv = jnp.zeros((ci.shape[0], 8), jnp.float32).at[:, 1:4].set(ci)   # embed_grade 1
    v = pallas_linear(mv, params["feat_W"], params["feat_b"])          # (N, hv*8)
    return s, v, coords_mean


def clifford_egnn_forward(params, batch, noise_key, k_nn):
    coords_b, positions_b, seqs_b, masks_b = batch
    protein_lengths = masks_b.sum(axis=1)
    bsz = coords_b.shape[0]
    batch_idx = jnp.repeat(jnp.arange(bsz), 3 * protein_lengths)
    coords = coords_b[masks_b].reshape(-1, 3)
    positions = jnp.repeat(positions_b[masks_b], 3)
    seqs = jnp.repeat(seqs_b[masks_b], 3)

    noise = jax.random.normal(noise_key, coords.shape, jnp.float32)
    noised_coords = coords + noise
    edge_index = knn_graph_jax(noised_coords, k_nn, batch_idx)

    # _forward
    s, v, coords_mean = featurization(params, seqs, noised_coords, batch_idx, bsz)
    for lp in params["layers"]:
        s, v = block_forward(lp, s, v, positions, edge_index)
    proj = pallas_linear(v, params["proj_W"], params["proj_b"])        # (N, out_features*8)
    denoised = proj[:, 1:4] + coords_mean

    loss_vec = jnp.mean((denoised - coords) ** 2, axis=1)
    return jnp.mean(loss_vec), {"loss": loss_vec}


# ----------------------------------------------------------------------------
if __name__ == "__main__":
    key = jax.random.PRNGKey(0)
    kp, kc, ks, kn = jax.random.split(key, 4)

    B, L = 2, 6                      # batch of 2 proteins, up to 6 residues each
    hs, hv = 32, 8                   # hidden_features, hidden_features_v
    num_layers, k_nn, num_tokens = 2, 4, 20

    raw_params = init_model(kp, hs, hv, num_tokens, num_layers)
    params = pack_model(raw_params, hs, hv)

    coords = 3.0 * jax.random.normal(kc, (B, L, 9), jnp.float32)    # 3 atoms x 3 coords / residue
    positions = jnp.tile(jnp.arange(L, dtype=jnp.float32)[None, :], (B, 1))
    seqs = jax.random.randint(ks, (B, L), 0, num_tokens)
    masks = jnp.array([[True] * L, [True] * (L - 1) + [False]])

    loss, aux = clifford_egnn_forward(params, (coords, positions, seqs, masks), kn, k_nn)
    jax.block_until_ready(loss)
    print("KERNEL_OK")
</pallas_src>

<mosaic_0001>
module attributes {stable_mosaic.version = 11 : i64} {
  func.func @_linear_kernel(%arg0: i32, %arg1: memref<128x8xf32, #tpu.memory_space<vmem>>, %arg2: memref<8x64xbf16, #tpu.memory_space<vmem>>, %arg3: memref<1x64xf32, #tpu.memory_space<vmem>>, %arg4: memref<128x64xf32, #tpu.memory_space<vmem>>) attributes {dimension_semantics = [#tpu.dimension_semantics<parallel>], iteration_bounds = array<i64: 1>, scalar_prefetch = 0 : i64, scratch_operands = 0 : i64, tpu.core_type = #tpu.core_type<tc>, window_params = [{transform_indices = @transform_0, window_bounds = array<i64: 128, 8>}, {pipeline_mode = #tpu.pipeline_mode<synchronous>, transform_indices = @transform_1, window_bounds = array<i64: 8, 64>}, {pipeline_mode = #tpu.pipeline_mode<synchronous>, transform_indices = @transform_2, window_bounds = array<i64: 1, 64>}, {transform_indices = @transform_3, window_bounds = array<i64: 128, 64>}]} {
    %c0 = arith.constant 0 : index
    %c0_0 = arith.constant 0 : index
    %0 = vector.load %arg1[%c0, %c0_0] : memref<128x8xf32, #tpu.memory_space<vmem>>, vector<128x8xf32>
    %1 = arith.truncf %0 : vector<128x8xf32> to vector<128x8xbf16>
    %c0_1 = arith.constant 0 : index
    %c0_2 = arith.constant 0 : index
    %2 = vector.load %arg2[%c0_1, %c0_2] : memref<8x64xbf16, #tpu.memory_space<vmem>>, vector<8x64xbf16>
    %cst = arith.constant dense<0.000000e+00> : vector<128x64xf32>
    %3 = tpu.matmul %1, %2, %cst {dimension_numbers = #tpu.dot_dimension_numbers<[1], [0], [0], [1], [0, 0, 1, 1], [], []>} : vector<128x8xbf16>, vector<8x64xbf16>, vector<128x64xf32> -> vector<128x64xf32>
    %c0_3 = arith.constant 0 : index
    %c0_4 = arith.constant 0 : index
    %4 = vector.load %arg3[%c0_3, %c0_4] : memref<1x64xf32, #tpu.memory_space<vmem>>, vector<1x64xf32>
    %5 = vector.broadcast %4 : vector<1x64xf32> to vector<128x64xf32>
    %6 = arith.addf %3, %5 : vector<128x64xf32>
    %c0_5 = arith.constant 0 : index
    %c0_6 = arith.constant 0 : index
    %7 = vector.load %arg4[%c0_5, %c0_6] : memref<128x64xf32, #tpu.memory_space<vmem>>, vector<128x64xf32>
    tpu.vector_store %arg4[%c0_5, %c0_6], %6 {strides = array<i32>} : memref<128x64xf32, #tpu.memory_space<vmem>>, vector<128x64xf32>,
    return
  }
  func.func @transform_0(%arg0: i32) -> (i32, i32) {
    %c0_i32 = arith.constant 0 : i32
    %c0_i32_0 = arith.constant 0 : i32
    return %arg0, %c0_i32 : i32, i32
  }
  func.func @transform_1(%arg0: i32) -> (i32, i32) {
    %c0_i32 = arith.constant 0 : i32
    %c0_i32_0 = arith.constant 0 : i32
    %c0_i32_1 = arith.constant 0 : i32
    return %c0_i32, %c0_i32_0 : i32, i32
  }
  func.func @transform_2(%arg0: i32) -> (i32, i32) {
    %c0_i32 = arith.constant 0 : i32
    %c0_i32_0 = arith.constant 0 : i32
    %c0_i32_1 = arith.constant 0 : i32
    return %c0_i32, %c0_i32_0 : i32, i32
  }
  func.func @transform_3(%arg0: i32) -> (i32, i32) {
    %c0_i32 = arith.constant 0 : i32
    %c0_i32_0 = arith.constant 0 : i32
    return %arg0, %c0_i32 : i32, i32
  }
}

</mosaic_0001>

<bundles_post_ra>
// kernel: tpu_custom_call.1
= control target key start
LH: loop header
LB: loop body
LE: loop exit
PB: predicated region body
PF: predicated region fallthrough
CT: control target
= control target key end

     0   :  { %vm72_vm0 = vcmask 1043456   ;;  %vm47_vm1 = vcmask 64512   ;;  %vm173_vm2 = vcmask 523264   ;;  %s380_s1 = inlined_call_operand.vmem [shape: bf16[8,64], index: 1, kind: input, shape index: {}]   ;;  %s381_s0 = inlined_call_operand.vmem [shape: f32[128,8], index: 0, kind: input, shape index: {}]   ;;  %s382_s2 = inlined_call_operand.vmem [shape: f32[1,64], index: 2, kind: input, shape index: {}]   ;;  %s383_s3 = inlined_call_operand.vmem [shape: f32[128,64], index: 3, kind: output, shape index: {}]  }
   0x1   :  { %v39_v0 = vld [vmem:[%s380_s1] sm:$0xf]  ;;  %v16_v2 = vld [vmem:[%s381_s0 + $0x8] sm:$0xff]  ;;  %v17_v7 = vld [vmem:[%s381_s0 + $0x10] sm:$0xff] }
   0x2   :  { %v15_v1 = vld [vmem:[%s381_s0] sm:$0xff]  ;;  %232 = vmatprep.subr.msk.bf16.mxu0 %vm72_vm0, %v39_v0  ;;  %233 = vmatprep.subr.msk.bf16.mxu1 %vm72_vm0, %v39_v0  ;;  %v74_v3 = vsel %vm72_vm0, %v39_v0, 0  ;;  %v24_v6 = vld [vmem:[%s381_s0 + $0x48] sm:$0xff]  ;;  %v18_v9 = vld [vmem:[%s381_s0 + $0x18] sm:$0xff] }
   0x3   :  { %v31_v4 = vpack.c.bf16 %v16_v2, %v15_v1  ;;  %v23_v5 = vld [vmem:[%s381_s0 + $0x40] sm:$0xff]  ;;  %213 = vmatpush3.bf16.msra.mxu0 %v74_v3  ;;  %231 = vmatpush3.bf16.msra.mxu1 %v74_v3  ;;  %v25_v10 = vld [vmem:[%s381_s0 + $0x50] sm:$0xff]  ;;  %v26_v11 = vld [vmem:[%s381_s0 + $0x58] sm:$0xff]  ;;  %v32_v12 = vpack.c.bf16 %v18_v9, %v17_v7 }
   0x4   :  { %v35_v8 = vpack.c.bf16 %v24_v6, %v23_v5  ;;  %v36_v13 = vpack.c.bf16 %v26_v11, %v25_v10  ;;  %v19_v14 = vld [vmem:[%s381_s0 + $0x20] sm:$0xff]  ;;  %v20_v15 = vld [vmem:[%s381_s0 + $0x28] sm:$0xff]  ;;  %v21_v20 = vld [vmem:[%s381_s0 + $0x30] sm:$0xff] }
   0x5   :  { %214 = vmatprep.mubr.msk.bf16.mxu0 %vm47_vm1, %v31_v4  ;;  %v27_v16 = vld [vmem:[%s381_s0 + $0x60] sm:$0xff]  ;;  %v33_v17 = vpack.c.bf16 %v20_v15, %v19_v14  ;;  %v28_v18 = vld [vmem:[%s381_s0 + $0x68] sm:$0xff]  ;;  %v22_v21 = vld [vmem:[%s381_s0 + $0x38] sm:$0xff] }
   0x6   :  { %222 = vmatprep.mubr.msk.bf16.mxu1 %vm47_vm1, %v35_v8  ;;  %215 = vmatmul.mubr.msk.bf16.vlgmr.msra.gmra.mrb[0].mxu0 %vm47_vm1, %v32_v12  ;;  %v37_v19 = vpack.c.bf16 %v28_v18, %v27_v16  ;;  %v29_v22 = vld [vmem:[%s381_s0 + $0x70] sm:$0xff]  ;;  %v30_v23 = vld [vmem:[%s381_s0 + $0x78] sm:$0xff]  ;;  %v34_v24 = vpack.c.bf16 %v22_v21, %v21_v20  ;;  %v194_v26 = vld [vmem:[%s382_s2] ss:$0 sm:$0xff] }
   0x7   :  { %223 = vmatmul.mubr.msk.bf16.vlgmr.msra.gmra.mrb[0].mxu1 %vm47_vm1, %v36_v13  ;;  %218 = vmatprep.mubr.msk.bf16.mxu0 %vm47_vm1, %v33_v17  ;;  %v38_v25 = vpack.c.bf16 %v30_v23, %v29_v22 }
   0x8   :  { %226 = vmatprep.mubr.msk.bf16.mxu1 %vm47_vm1, %v37_v19 }
   0xe   :  { %219 = vmatmul.mubr.msk.bf16.gmra.mrb[4].mxu0 %vm47_vm1, %v34_v24 }
   0xf   :  { %227 = vmatmul.mubr.msk.bf16.gmra.mrb[4].mxu1 %vm47_vm1, %v38_v25 }
  0xd9   :  { %v216_v27 = vpop.f32.mrb[0].mxu0 }
  0xda   :  { %v224_v28 = vpop.f32.mrb[0].mxu1  ;;  %v119_v29 = vadd.f32 %v216_v27, %v194_v26  ;;  %v110_v31 = vpop.f32.mrb[1].mxu0 }
  0xdb   :  { %v151_v30 = vadd.f32 %v224_v28, %v194_v26  ;;  %v142_v32 = vpop.f32.mrb[1].mxu1  ;;  %v111_v33 = vadd.f32 %v194_v26, %v110_v31  ;;  %v217_v35 = vpop.f32.mrb[2].mxu0 }
  0xdc   :  { %v143_v34 = vadd.f32 %v194_v26, %v142_v32  ;;  %v225_v36 = vpop.f32.mrb[2].mxu1  ;;  %176 = vst.msk [vmem:[%s383_s3 + $0x10] sm:$0xff] %vm173_vm2, %v119_v29  ;;  %v122_v37 = vadd.f32 %v217_v35, %v194_v26  ;;  %v113_v39 = vpop.f32.mrb[3].mxu0 }
  0xdd   :  { %184 = vst.msk [vmem:[%s383_s3 + $0x50] sm:$0xff] %vm173_vm2, %v151_v30  ;;  %v154_v38 = vadd.f32 %v225_v36, %v194_v26  ;;  %v145_v40 = vpop.f32.mrb[3].mxu1  ;;  %174 = vst.msk [vmem:[%s383_s3] sm:$0xff] %vm173_vm2, %v111_v33  ;;  %v114_v41 = vadd.f32 %v194_v26, %v113_v39 }
  0xde   :  { %182 = vst.msk [vmem:[%s383_s3 + $0x40] sm:$0xff] %vm173_vm2, %v143_v34  ;;  %v146_v42 = vadd.f32 %v194_v26, %v145_v40  ;;  %177 = vst.msk [vmem:[%s383_s3 + $0x18] sm:$0xff] %vm173_vm2, %v122_v37 }
  0xdf   :  { %185 = vst.msk [vmem:[%s383_s3 + $0x58] sm:$0xff] %vm173_vm2, %v154_v38  ;;  %175 = vst.msk [vmem:[%s383_s3 + $0x8] sm:$0xff] %vm173_vm2, %v114_v41 }
  0xe0   :  { %183 = vst.msk [vmem:[%s383_s3 + $0x48] sm:$0xff] %vm173_vm2, %v146_v42 }
  0xe1   :  { %v220_v43 = vpop.f32.mrb[4].mxu0 }
  0xe2   :  { %v228_v44 = vpop.f32.mrb[4].mxu1  ;;  %v135_v45 = vadd.f32 %v220_v43, %v194_v26  ;;  %v126_v47 = vpop.f32.mrb[5].mxu0 }
  0xe3   :  { %v167_v46 = vadd.f32 %v228_v44, %v194_v26  ;;  %v158_v48 = vpop.f32.mrb[5].mxu1  ;;  %v127_v49 = vadd.f32 %v194_v26, %v126_v47  ;;  %v221_v51 = vpop.f32.mrb[6].mxu0 }
  0xe4   :  { %v159_v50 = vadd.f32 %v194_v26, %v158_v48  ;;  %v229_v52 = vpop.f32.mrb[6].mxu1  ;;  %180 = vst.msk [vmem:[%s383_s3 + $0x30] sm:$0xff] %vm173_vm2, %v135_v45  ;;  %v138_v53 = vadd.f32 %v221_v51, %v194_v26  ;;  %v129_v55 = vpop.f32.mrb[7].mxu0 }
  0xe5   :  { %188 = vst.msk [vmem:[%s383_s3 + $0x70] sm:$0xff] %vm173_vm2, %v167_v46  ;;  %v170_v54 = vadd.f32 %v229_v52, %v194_v26  ;;  %v161_v56 = vpop.f32.mrb[7].mxu1  ;;  %178 = vst.msk [vmem:[%s383_s3 + $0x20] sm:$0xff] %vm173_vm2, %v127_v49  ;;  %v130_v57 = vadd.f32 %v194_v26, %v129_v55 }
  0xe6   :  { %186 = vst.msk [vmem:[%s383_s3 + $0x60] sm:$0xff] %vm173_vm2, %v159_v50  ;;  %v162_v58 = vadd.f32 %v194_v26, %v161_v56  ;;  %181 = vst.msk [vmem:[%s383_s3 + $0x38] sm:$0xff] %vm173_vm2, %v138_v53 }
  0xe7   :  { %189 = vst.msk [vmem:[%s383_s3 + $0x78] sm:$0xff] %vm173_vm2, %v170_v54  ;;  %179 = vst.msk [vmem:[%s383_s3 + $0x28] sm:$0xff] %vm173_vm2, %v130_v57 }
  0xe8   :  { %187 = vst.msk [vmem:[%s383_s3 + $0x68] sm:$0xff] %vm173_vm2, %v162_v58 }

</bundles_post_ra>
